<compile_context>
chip_gen: v6e
topology: v6e:2x2x1
jax: 0.10.0
libtpu: 0.0.40
codegen_flags: <defaults>
</compile_context>

<pallas_src>
import jax
import jax.numpy as jnp
from jax.experimental import pallas as pl
from jax.experimental.pallas import tpu as pltpu

# ---- model hyper-parameters (small, consistent with the module) ----
VOCAB_SIZE = 128
EMBEDDING_DIM = 16
LENGTH_OF_SEQUENCE = 8
N_STEPS = LENGTH_OF_SEQUENCE - 1          # 7
N_HIDDEN = 32
BATCH = 8
FLAT_DIM = N_STEPS * EMBEDDING_DIM        # 112

PAD = 128                                 # lane-padded F and H
K_GATHER = N_STEPS * VOCAB_SIZE           # 896 : one-hot / stacked-table K dim


def nnlm_kernel(tok_ref, es_ref, hw_ref, d_ref, w_ref, u_ref, b_ref, y_ref):
    """Fully fused NNLM forward (single invocation, everything in VMEM/vregs).

    tok_ref : (B, n_steps)        int32  token indices (VMEM -> vregs)
    es_ref  : (n_steps*V, PAD)    f32    stacked per-position embedding table
    hw_ref  : (PAD, PAD)          f32    zero-padded hidden projection H
    d_ref   : (1, PAD)            f32    zero-padded hidden bias d
    w_ref   : (PAD, V)            f32    zero-padded direct projection W
    u_ref   : (PAD, V)            f32    zero-padded output projection U
    b_ref   : (1, V)              f32    output bias b
    y_ref   : (B, V)              f32    logits (softmax not applied, as in module)
    """
    B, n_steps = tok_ref.shape
    V = y_ref.shape[1]
    kw = es_ref.shape[0]                  # n_steps * V

    # --- vectorized embedding gather as one MXU pass -----------------------
    # one-hot[i, t*V + v] = (tok[i, t] == v); built directly in the (B, 896)
    # lane layout (no 3-D reshape / relayout).  7 cheap VPU compare+selects.
    tok = tok_ref[...]                                        # (B, n_steps)
    col = jax.lax.broadcasted_iota(jnp.int32, (B, kw), 1)     # (B, 896)
    onehot = jnp.zeros((B, kw), jnp.float32)
    for t in range(n_steps):
        tgt = tok[:, t:t + 1] + t * V                         # (B, 1)
        onehot = jnp.where(col == tgt, 1.0, onehot)

    # x_pad = onehot @ E_stacked : (B,896)@(896,128) -> lane-padded flat embed.
    x_pad = jnp.dot(onehot, es_ref[...], preferred_element_type=jnp.float32)

    # --- hidden path: tanh(d + x @ H) (EUP tanh overlaps the W-half matmul) --
    hx = jnp.dot(x_pad, hw_ref[...], preferred_element_type=jnp.float32)
    hidden = jnp.tanh(d_ref[...] + hx)                        # (B, PAD)

    # --- logits: y = b + x @ W + hidden @ U ---------------------------------
    yw = jnp.dot(x_pad, w_ref[...], preferred_element_type=jnp.float32)
    yu = jnp.dot(hidden, u_ref[...], preferred_element_type=jnp.float32)
    y_ref[...] = (b_ref[...] + yw + yu).astype(y_ref.dtype)


def prepare_params(embedding, h_w, d, u_w, w_w, b):
    """One-time weight prep: stacked embedding table + lane padding."""
    V, E = embedding.shape
    F, H = h_w.shape

    # Block t of E_stacked holds the embedding table in columns [t*E,(t+1)*E).
    e_stacked = jnp.zeros((N_STEPS * V, PAD), jnp.float32)
    for t in range(N_STEPS):
        e_stacked = e_stacked.at[t * V:(t + 1) * V, t * E:(t + 1) * E].set(
            embedding.astype(jnp.float32))

    hw_pad = jnp.zeros((PAD, PAD), jnp.float32).at[:F, :H].set(h_w)
    # d padded with zeros -> tanh(0) = 0 in the dead hidden lanes...
    d_pad = jnp.zeros((1, PAD), jnp.float32).at[:, :H].set(d)
    # ...and the matching U rows are zero, so padding never touches the logits.
    w_pad = jnp.zeros((PAD, V), jnp.float32).at[:F, :].set(w_w)
    u_pad = jnp.zeros((PAD, V), jnp.float32).at[:H, :].set(u_w)
    b2 = b.astype(jnp.float32).reshape(1, V)
    return e_stacked, hw_pad, d_pad, w_pad, u_pad, b2


def nnlm_forward(tokens, params):
    """tokens: (B, n_steps) int32 indices.  params from prepare_params()."""
    e_stacked, hw_pad, d_pad, w_pad, u_pad, b2 = params
    B = tokens.shape[0]
    V = w_pad.shape[1]

    vmem = pl.BlockSpec(memory_space=pltpu.MemorySpace.VMEM)
    return pl.pallas_call(
        nnlm_kernel,
        out_shape=jax.ShapeDtypeStruct((B, V), jnp.float32),
        in_specs=[vmem] * 7,
        out_specs=vmem,
    )(tokens.astype(jnp.int32), e_stacked, hw_pad, d_pad, w_pad, u_pad, b2)


if __name__ == "__main__":
    key = jax.random.PRNGKey(0)
    k_emb, k_h, k_u, k_w, k_tok = jax.random.split(key, 5)

    # Deterministic synthetic parameters (shapes from the module __init__).
    embedding = jax.random.normal(k_emb, (VOCAB_SIZE, EMBEDDING_DIM), jnp.float32) * 0.1
    # PyTorch nn.Linear stores weight as (out, in); we keep (in, out) for the kernel.
    h_w = jax.random.normal(k_h, (FLAT_DIM, N_HIDDEN), jnp.float32) * 0.1
    u_w = jax.random.normal(k_u, (N_HIDDEN, VOCAB_SIZE), jnp.float32) * 0.1
    w_w = jax.random.normal(k_w, (FLAT_DIM, VOCAB_SIZE), jnp.float32) * 0.1
    d = jnp.ones((N_HIDDEN,), jnp.float32)     # nn.Parameter(torch.ones(n_hidden))
    b = jnp.ones((VOCAB_SIZE,), jnp.float32)   # nn.Parameter(torch.ones(vocab_size))

    tokens = jax.random.randint(k_tok, (BATCH, N_STEPS), 0, VOCAB_SIZE, jnp.int32)

    params = prepare_params(embedding, h_w, d, u_w, w_w, b)
    y = nnlm_forward(tokens, params)
    jax.block_until_ready(y)

    # Pure-JAX reference check (original, unpadded weights).
    emb = jnp.take(embedding, tokens, axis=0).reshape(BATCH, -1)
    y_ref = b + emb @ w_w + jnp.tanh(d + emb @ h_w) @ u_w
    assert y.shape == (BATCH, VOCAB_SIZE)
    assert jnp.allclose(y, y_ref, atol=1e-4, rtol=1e-4)

    print("KERNEL_OK")
</pallas_src>

<mosaic_0001>
module attributes {stable_mosaic.version = 11 : i64} {
  func.func @nnlm_kernel(%arg0: memref<8x7xi32, #tpu.memory_space<vmem>>, %arg1: memref<896x128xf32, #tpu.memory_space<vmem>>, %arg2: memref<128x128xf32, #tpu.memory_space<vmem>>, %arg3: memref<1x128xf32, #tpu.memory_space<vmem>>, %arg4: memref<128x128xf32, #tpu.memory_space<vmem>>, %arg5: memref<128x128xf32, #tpu.memory_space<vmem>>, %arg6: memref<1x128xf32, #tpu.memory_space<vmem>>, %arg7: memref<8x128xf32, #tpu.memory_space<vmem>>) attributes {dimension_semantics = [], scalar_prefetch = 0 : i64, scratch_operands = 0 : i64, tpu.core_type = #tpu.core_type<tc>} {
    %c0 = arith.constant 0 : index
    %c0_0 = arith.constant 0 : index
    %0 = vector.load %arg0[%c0, %c0_0] : memref<8x7xi32, #tpu.memory_space<vmem>>, vector<8x7xi32>
    %1 = tpu.iota {dimensions = array<i32: 1>} : vector<8x896xi32>
    %cst = arith.constant 0.000000e+00 : f32
    %2 = vector.broadcast %cst : f32 to vector<8x896xf32>
    %3 = vector.extract_strided_slice %0 {offsets = [0, 0], sizes = [8, 1], strides = [1, 1]} : vector<8x7xi32> to vector<8x1xi32>
    %c0_i32 = arith.constant 0 : i32
    %4 = vector.broadcast %c0_i32 : i32 to vector<8x1xi32>
    %5 = arith.addi %3, %4 : vector<8x1xi32>
    %6 = vector.broadcast %5 : vector<8x1xi32> to vector<8x896xi32>
    %7 = arith.cmpi eq, %1, %6 : vector<8x896xi32>
    %cst_1 = arith.constant 1.000000e+00 : f32
    %8 = vector.broadcast %cst_1 : f32 to vector<8x896xf32>
    %9 = arith.select %7, %8, %2 : vector<8x896xi1>, vector<8x896xf32>
    %10 = vector.extract_strided_slice %0 {offsets = [0, 1], sizes = [8, 1], strides = [1, 1]} : vector<8x7xi32> to vector<8x1xi32>
    %c128_i32 = arith.constant 128 : i32
    %11 = vector.broadcast %c128_i32 : i32 to vector<8x1xi32>
    %12 = arith.addi %10, %11 : vector<8x1xi32>
    %13 = vector.broadcast %12 : vector<8x1xi32> to vector<8x896xi32>
    %14 = arith.cmpi eq, %1, %13 : vector<8x896xi32>
    %cst_2 = arith.constant 1.000000e+00 : f32
    %15 = vector.broadcast %cst_2 : f32 to vector<8x896xf32>
    %16 = arith.select %14, %15, %9 : vector<8x896xi1>, vector<8x896xf32>
    %17 = vector.extract_strided_slice %0 {offsets = [0, 2], sizes = [8, 1], strides = [1, 1]} : vector<8x7xi32> to vector<8x1xi32>
    %c256_i32 = arith.constant 256 : i32
    %18 = vector.broadcast %c256_i32 : i32 to vector<8x1xi32>
    %19 = arith.addi %17, %18 : vector<8x1xi32>
    %20 = vector.broadcast %19 : vector<8x1xi32> to vector<8x896xi32>
    %21 = arith.cmpi eq, %1, %20 : vector<8x896xi32>
    %cst_3 = arith.constant 1.000000e+00 : f32
    %22 = vector.broadcast %cst_3 : f32 to vector<8x896xf32>
    %23 = arith.select %21, %22, %16 : vector<8x896xi1>, vector<8x896xf32>
    %24 = vector.extract_strided_slice %0 {offsets = [0, 3], sizes = [8, 1], strides = [1, 1]} : vector<8x7xi32> to vector<8x1xi32>
    %c384_i32 = arith.constant 384 : i32
    %25 = vector.broadcast %c384_i32 : i32 to vector<8x1xi32>
    %26 = arith.addi %24, %25 : vector<8x1xi32>
    %27 = vector.broadcast %26 : vector<8x1xi32> to vector<8x896xi32>
    %28 = arith.cmpi eq, %1, %27 : vector<8x896xi32>
    %cst_4 = arith.constant 1.000000e+00 : f32
    %29 = vector.broadcast %cst_4 : f32 to vector<8x896xf32>
    %30 = arith.select %28, %29, %23 : vector<8x896xi1>, vector<8x896xf32>
    %31 = vector.extract_strided_slice %0 {offsets = [0, 4], sizes = [8, 1], strides = [1, 1]} : vector<8x7xi32> to vector<8x1xi32>
    %c512_i32 = arith.constant 512 : i32
    %32 = vector.broadcast %c512_i32 : i32 to vector<8x1xi32>
    %33 = arith.addi %31, %32 : vector<8x1xi32>
    %34 = vector.broadcast %33 : vector<8x1xi32> to vector<8x896xi32>
    %35 = arith.cmpi eq, %1, %34 : vector<8x896xi32>
    %cst_5 = arith.constant 1.000000e+00 : f32
    %36 = vector.broadcast %cst_5 : f32 to vector<8x896xf32>
    %37 = arith.select %35, %36, %30 : vector<8x896xi1>, vector<8x896xf32>
    %38 = vector.extract_strided_slice %0 {offsets = [0, 5], sizes = [8, 1], strides = [1, 1]} : vector<8x7xi32> to vector<8x1xi32>
    %c640_i32 = arith.constant 640 : i32
    %39 = vector.broadcast %c640_i32 : i32 to vector<8x1xi32>
    %40 = arith.addi %38, %39 : vector<8x1xi32>
    %41 = vector.broadcast %40 : vector<8x1xi32> to vector<8x896xi32>
    %42 = arith.cmpi eq, %1, %41 : vector<8x896xi32>
    %cst_6 = arith.constant 1.000000e+00 : f32
    %43 = vector.broadcast %cst_6 : f32 to vector<8x896xf32>
    %44 = arith.select %42, %43, %37 : vector<8x896xi1>, vector<8x896xf32>
    %45 = vector.extract_strided_slice %0 {offsets = [0, 6], sizes = [8, 1], strides = [1, 1]} : vector<8x7xi32> to vector<8x1xi32>
    %c768_i32 = arith.constant 768 : i32
    %46 = vector.broadcast %c768_i32 : i32 to vector<8x1xi32>
    %47 = arith.addi %45, %46 : vector<8x1xi32>
    %48 = vector.broadcast %47 : vector<8x1xi32> to vector<8x896xi32>
    %49 = arith.cmpi eq, %1, %48 : vector<8x896xi32>
    %cst_7 = arith.constant 1.000000e+00 : f32
    %50 = vector.broadcast %cst_7 : f32 to vector<8x896xf32>
    %51 = arith.select %49, %50, %44 : vector<8x896xi1>, vector<8x896xf32>
    %c0_8 = arith.constant 0 : index
    %c0_9 = arith.constant 0 : index
    %52 = vector.load %arg1[%c0_8, %c0_9] : memref<896x128xf32, #tpu.memory_space<vmem>>, vector<896x128xf32>
    %cst_10 = arith.constant dense<0.000000e+00> : vector<8x128xf32>
    %53 = tpu.matmul %51, %52, %cst_10 {dimension_numbers = #tpu.dot_dimension_numbers<[1], [0], [0], [1], [0, 0, 1, 1], [], []>} : vector<8x896xf32>, vector<896x128xf32>, vector<8x128xf32> -> vector<8x128xf32>
    %c0_11 = arith.constant 0 : index
    %c0_12 = arith.constant 0 : index
    %54 = vector.load %arg2[%c0_11, %c0_12] : memref<128x128xf32, #tpu.memory_space<vmem>>, vector<128x128xf32>
    %cst_13 = arith.constant dense<0.000000e+00> : vector<8x128xf32>
    %55 = tpu.matmul %53, %54, %cst_13 {dimension_numbers = #tpu.dot_dimension_numbers<[1], [0], [0], [1], [0, 0, 1, 1], [], []>} : vector<8x128xf32>, vector<128x128xf32>, vector<8x128xf32> -> vector<8x128xf32>
    %c0_14 = arith.constant 0 : index
    %c0_15 = arith.constant 0 : index
    %56 = vector.load %arg3[%c0_14, %c0_15] : memref<1x128xf32, #tpu.memory_space<vmem>>, vector<1x128xf32>
    %57 = vector.broadcast %56 : vector<1x128xf32> to vector<8x128xf32>
    %58 = arith.addf %57, %55 : vector<8x128xf32>
    %59 = math.tanh %58 : vector<8x128xf32>
    %c0_16 = arith.constant 0 : index
    %c0_17 = arith.constant 0 : index
    %60 = vector.load %arg4[%c0_16, %c0_17] : memref<128x128xf32, #tpu.memory_space<vmem>>, vector<128x128xf32>
    %cst_18 = arith.constant dense<0.000000e+00> : vector<8x128xf32>
    %61 = tpu.matmul %53, %60, %cst_18 {dimension_numbers = #tpu.dot_dimension_numbers<[1], [0], [0], [1], [0, 0, 1, 1], [], []>} : vector<8x128xf32>, vector<128x128xf32>, vector<8x128xf32> -> vector<8x128xf32>
    %c0_19 = arith.constant 0 : index
    %c0_20 = arith.constant 0 : index
    %62 = vector.load %arg5[%c0_19, %c0_20] : memref<128x128xf32, #tpu.memory_space<vmem>>, vector<128x128xf32>
    %cst_21 = arith.constant dense<0.000000e+00> : vector<8x128xf32>
    %63 = tpu.matmul %59, %62, %cst_21 {dimension_numbers = #tpu.dot_dimension_numbers<[1], [0], [0], [1], [0, 0, 1, 1], [], []>} : vector<8x128xf32>, vector<128x128xf32>, vector<8x128xf32> -> vector<8x128xf32>
    %c0_22 = arith.constant 0 : index
    %c0_23 = arith.constant 0 : index
    %64 = vector.load %arg6[%c0_22, %c0_23] : memref<1x128xf32, #tpu.memory_space<vmem>>, vector<1x128xf32>
    %65 = vector.broadcast %64 : vector<1x128xf32> to vector<8x128xf32>
    %66 = arith.addf %65, %61 : vector<8x128xf32>
    %67 = arith.addf %66, %63 : vector<8x128xf32>
    %c0_24 = arith.constant 0 : index
    %c0_25 = arith.constant 0 : index
    %68 = vector.load %arg7[%c0_24, %c0_25] : memref<8x128xf32, #tpu.memory_space<vmem>>, vector<8x128xf32>
    tpu.vector_store %arg7[%c0_24, %c0_25], %67 {strides = array<i32>} : memref<8x128xf32, #tpu.memory_space<vmem>>, vector<8x128xf32>,
    return
  }
}

</mosaic_0001>

<bundles_post_ra>
// kernel: tpu_custom_call.1
= control target key start
LH: loop header
LB: loop body
LE: loop exit
PB: predicated region body
PF: predicated region fallthrough
CT: control target
= control target key end

     0   :  { %12 = vsyncpa [#allocation3], 0  ;;  %s1722_s0 = inlined_call_operand.hbm [shape: s32[8,7], index: 0, kind: input, shape index: {}]   ;;  %s1723_s1 = inlined_call_operand.hbm [shape: f32[896,128], index: 1, kind: input, shape index: {}]   ;;  %s1724_s2 = inlined_call_operand.hbm [shape: f32[128,128], index: 2, kind: input, shape index: {}]   ;;  %s1725_s3 = inlined_call_operand.vmem [shape: f32[1,128], index: 3, kind: input, shape index: {}]   ;;  %s1726_s4 = inlined_call_operand.hbm [shape: f32[128,128], index: 4, kind: input, shape index: {}]   ;;  %s1727_s5 = inlined_call_operand.hbm [shape: f32[128,128], index: 5, kind: input, shape index: {}]   ;;  %s1728_s6 = inlined_call_operand.vmem [shape: f32[1,128], index: 6, kind: input, shape index: {}]   ;;  %s1729_s7 = inlined_call_operand.hbm [shape: f32[8,128], index: 7, kind: output, shape index: {}]  }
   0x1   :  { %13 = vsyncpa [#allocation6], 0 }
   0x2   :  { %14 = vsyncpa [#allocation9], 0 }
   0x3   :  { %15 = vsyncpa [#allocation4], 0  ;;  %s1383_s24 = smov [#allocation5]  }
   0x4   :  { %s31_s25 = sshll.u32 %s1383_s24, 4  ;;  %s32_s25 = int_to_ptr.vmem [resolvable:$true] %s31_s25 }
   0x5   :  { %s1263_s26 = scalar_lea.vmem %s32_s25, 14336  ;;  %p1268_p1 = scmp.lt.s32.totalorder %s32_s25, %s32_s25 }
   0x6   :  { %p1264_p0 = scmp.ne.s32.totalorder %s32_s25, %s1263_s26  ;;  %p1269_p2 = scmp.lt.s32.totalorder %s1263_s26, %s1263_s26 }
   0x8   :  { %p1270_p3 = por %p1269_p2, %p1268_p1 }
   0xa   :  { %p1271_p4 = pnand %p1270_p3, %p1264_p0 }
   0xc   :  { %1274 = shalt.err (!%p1271_p4)
}
   0xd   :  { %s1384_s27 = smov 128   ;;  %s1385_s28 = smov 8  }
   0xe   :  { %37 = dma.hbm_to_vmem [thread:$0]  %s1723_s1, 14336, %s32_s25, [#allocation6], %s1384_s27, %s1384_s27, %s1385_s28  }
   0xf   :  { %s1386_s8 = smov [#allocation8]   ;;  %s1387_s10 = smov [#allocation2]  }
  0x10   :  { %s57_s9 = sshll.u32 %s1386_s8, 4  ;;  %s22_s11 = sshll.u32 %s1387_s10, 4  ;;  %s58_s9 = int_to_ptr.vmem [resolvable:$true] %s57_s9  ;;  %s23_s11 = int_to_ptr.vmem [resolvable:$true] %s22_s11 }
  0x11   :  { %s1283_s12 = scalar_lea.vmem %s58_s9, 2048  ;;  %p1288_p6 = scmp.lt.s32.totalorder %s58_s9, %s58_s9 }
  0x12   :  { %p1284_p5 = scmp.ne.s32.totalorder %s58_s9, %s1283_s12  ;;  %p1289_p7 = scmp.lt.s32.totalorder %s1283_s12, %s1283_s12 }
  0x14   :  { %p1290_p8 = por %p1289_p7, %p1288_p6 }
  0x16   :  { %p1291_p9 = pnand %p1290_p8, %p1284_p5 }
  0x18   :  { %1294 = shalt.err (!%p1291_p9)
}
  0x19   :  { %63 = dma.hbm_to_vmem [thread:$0]  %s1726_s4, 2048, %s58_s9, [#allocation9], %s1384_s27, %s1384_s27, %s1385_s28  }
  0x1a   :  { %s1303_s1 = scalar_lea.vmem %s23_s11, 128  ;;  %p1308_p11 = scmp.lt.s32.totalorder %s23_s11, %s23_s11 }
  0x1b   :  { %p1304_p10 = scmp.ne.s32.totalorder %s23_s11, %s1303_s1  ;;  %p1309_p12 = scmp.lt.s32.totalorder %s1303_s1, %s1303_s1 }
  0x1d   :  { %p1310_p13 = por %p1309_p12, %p1308_p11 }
  0x1f   :  { %p1311_p0 = pnand %p1310_p13, %p1304_p10 }
  0x21   :  { %1314 = shalt.err (!%p1311_p0)
}
  0x22   :  { %25 = dma.hbm_to_vmem [thread:$0]  %s1722_s0, 128, %s23_s11, [#allocation3]  }
  0x23   :  { %s1388_s17 = smov [#allocation7]   ;;  %s1389_s19 = smov [#allocation10]  }
  0x24   :  { %s43_s18 = sshll.u32 %s1388_s17, 4  ;;  %s69_s20 = sshll.u32 %s1389_s19, 4  ;;  %s44_s18 = int_to_ptr.vmem [resolvable:$true] %s43_s18  ;;  %s70_s20 = int_to_ptr.vmem [resolvable:$true] %s69_s20 }
  0x25   :  { %s1323_s21 = scalar_lea.vmem %s44_s18, 2048  ;;  %p1328_p2 = scmp.lt.s32.totalorder %s44_s18, %s44_s18 }
  0x26   :  { %p1324_p1 = scmp.ne.s32.totalorder %s44_s18, %s1323_s21  ;;  %p1329_p3 = scmp.lt.s32.totalorder %s1323_s21, %s1323_s21 }
  0x28   :  { %p1330_p4 = por %p1329_p3, %p1328_p2 }
  0x2a   :  { %p1331_p5 = pnand %p1330_p4, %p1324_p1 }
  0x2c   :  { %1334 = shalt.err (!%p1331_p5)
}
  0x2d   :  { %49 = dma.hbm_to_vmem [thread:$0]  %s1724_s2, 2048, %s44_s18, [#allocation6], %s1384_s27, %s1384_s27, %s1385_s28  }
  0x2e   :  { %s1343_s0 = scalar_lea.vmem %s70_s20, 2048  ;;  %p1348_p7 = scmp.lt.s32.totalorder %s70_s20, %s70_s20 }
  0x2f   :  { %p1344_p6 = scmp.ne.s32.totalorder %s70_s20, %s1343_s0  ;;  %p1349_p8 = scmp.lt.s32.totalorder %s1343_s0, %s1343_s0 }
  0x31   :  { %p1350_p9 = por %p1349_p8, %p1348_p7 }
  0x33   :  { %p1351_p10 = pnand %p1350_p9, %p1344_p6 }
  0x35   :  { %1354 = shalt.err (!%p1351_p10)
}
  0x36   :  { %75 = dma.hbm_to_vmem [thread:$0]  %s1727_s5, 2048, %s70_s20, [#allocation9], %s1384_s27, %s1384_s27, %s1385_s28  }
  0x37   :  { %1375 = dma.done.wait [#allocation3], 128  }
  0x38   :  { %1376 = vsyncadd [#allocation3], 4294967168 }
  0x39   :  { %1377 = dma.done.wait [#allocation6], 16384  }
  0x3a   :  { %1378 = vsyncadd [#allocation6], 4294950912 }
  0x3b   :  { %1379 = dma.done.wait [#allocation9], 4096  }
  0x3c   :  { %1380 = vsyncadd [#allocation9], 4294963200  ;;  %v1390_v0 = vmov 0   ;;  %v1391_v1 = vmov 2   ;;  %v93_v2 = vld [vmem:[#allocation2] sm:$0xff]  ;;  %v257_v9 = vld [vmem:[#allocation5 + $0xf0] sm:$0xff] }
  0x3d   :  { %1245 = vset.pattern.permute.xlu0 %v1390_v0  ;;  %1247 = vset.pattern.permute.xlu1 %v1391_v1  ;;  %v258_v3 = vld [vmem:[#allocation5 + $0xf8] sm:$0xff]  ;;  %v137_v5 = vadd.s32 256, %v93_v2  ;;  %v119_v8 = vadd.s32 128, %v93_v2  ;;  %v289_v10 = vld [vmem:[#allocation5 + $0x1f0] sm:$0xff]  ;;  %v155_v13 = vadd.s32 384, %v93_v2  ;;  %v256_v14 = vld [vmem:[#allocation5 + $0xe8] sm:$0xff] }
  0x3e   :  { %v290_v4 = vld [vmem:[#allocation5 + $0x1f8] sm:$0xff]  ;;  %103 = vperm.xlu0 %1245, %v93_v2   ;;  %915 = vmatprep.subr.mxu0 %v258_v3  ;;  %v241_v11 = vld [vmem:[#allocation5 + $0x70] sm:$0xff]  ;;  %v1392_v15 = vmov 1   ;;  %v288_v16 = vld [vmem:[#allocation5 + $0x1e8] sm:$0xff]  ;;  %v1393_v19 = vmov 3   ;;  %v191_v20 = vadd.s32 640, %v93_v2 }
  0x3f   :  { %v242_v6 = vld [vmem:[#allocation5 + $0x78] sm:$0xff]  ;;  %950 = vmatprep.subr.mxu1 %v290_v4  ;;  %139 = vperm.xlu1 %1247, %v137_v5   ;;  %v273_v12 = vld [vmem:[#allocation5 + $0x170] sm:$0xff]  ;;  %v240_v17 = vld [vmem:[#allocation5 + $0x68] sm:$0xff]  ;;  %v173_v23 = vadd.s32 512, %v93_v2  ;;  %v1394_v25 = vmov 5   ;;  %v1395_v29 = vmov 4  }
  0x40   :  { %v274_v7 = vld [vmem:[#allocation5 + $0x178] sm:$0xff]  ;;  %916 = vmatpush3.msra.mxu0 %v242_v6  ;;  %v272_v18 = vld [vmem:[#allocation5 + $0x168] sm:$0xff]  ;;  %v255_v21 = vld [vmem:[#allocation5 + $0xe0] sm:$0xff]  ;;  %v209_v34 = vadd.s32 768, %v93_v2  ;;  %v1396_v39 = vmov 6   ;;  %s1399_s27 = smov [#allocation11]  }
  0x41   :  { %951 = vmatpush3.msra.mxu1 %v274_v7  ;;  %917 = vmatprep.subr.mxu0 %v257_v9  ;;  %v287_v22 = vld [vmem:[#allocation5 + $0x1e0] sm:$0xff]  ;;  %v254_v27 = vld [vmem:[#allocation5 + $0xd8] sm:$0xff]  ;;  %v253_v32 = vld [vmem:[#allocation5 + $0xd0] sm:$0xff]  ;;  %s902_s28 = sshll.u32 %s1399_s27, 4  ;;  %s903_s28 = int_to_ptr.vmem [resolvable:$true] %s902_s28 }
  0x42   :  { %952 = vmatprep.subr.mxu1 %v289_v10  ;;  %1246 = vset.pattern.permute.xlu0 %v1392_v15  ;;  %v239_v24 = vld [vmem:[#allocation5 + $0x60] sm:$0xff]  ;;  %v286_v28 = vld [vmem:[#allocation5 + $0x1d8] sm:$0xff]  ;;  %v285_v33 = vld [vmem:[#allocation5 + $0x1d0] sm:$0xff]  ;;  %v1397_v15 = vmov 0.0   ;;  %p1360_p12 = scmp.lt.s32.totalorder %s903_s28, %s903_s28 }
  0x43   :  { %918 = vmatpush3.msra.mxu0 %v241_v11  ;;  %121 = vperm.xlu0 %1246, %v119_v8   ;;  %v271_v26 = vld [vmem:[#allocation5 + $0x160] sm:$0xff]  ;;  %v238_v30 = vld [vmem:[#allocation5 + $0x58] sm:$0xff]  ;;  %v237_v35 = vld [vmem:[#allocation5 + $0x50] sm:$0xff] }
  0x44   :  { %953 = vmatpush3.msra.mxu1 %v273_v12  ;;  %1248 = vset.pattern.permute.xlu1 %v1393_v19  ;;  %v270_v31 = vld [vmem:[#allocation5 + $0x158] sm:$0xff]  ;;  %v269_v36 = vld [vmem:[#allocation5 + $0x150] sm:$0xff]  ;;  %v252_v37 = vld [vmem:[#allocation5 + $0xc8] sm:$0xff] }
  0x45   :  { %919 = vmatprep.subr.mxu0 %v256_v14  ;;  %157 = vperm.xlu1 %1248, %v155_v13   ;;  %v284_v38 = vld [vmem:[#allocation5 + $0x1c8] sm:$0xff]  ;;  %v251_v42 = vld [vmem:[#allocation5 + $0xc0] sm:$0xff]  ;;  %v250_v46 = vld [vmem:[#allocation5 + $0xb8] sm:$0xff] }
  0x46   :  { %954 = vmatprep.subr.mxu1 %v288_v16  ;;  %920 = vmatpush3.msra.mxu0 %v240_v17  ;;  %v236_v40 = vld [vmem:[#allocation5 + $0x48] sm:$0xff]  ;;  %v283_v43 = vld [vmem:[#allocation5 + $0x1c0] sm:$0xff]  ;;  %v282_v47 = vld [vmem:[#allocation5 + $0x1b8] sm:$0xff]  ;;  %v94_v16 = vlaneseq }
  0x47   :  { %955 = vmatpush3.msra.mxu1 %v272_v18  ;;  %1250 = vset.pattern.permute.xlu0 %v1394_v25  ;;  %v268_v41 = vld [vmem:[#allocation5 + $0x148] sm:$0xff]  ;;  %v235_v44 = vld [vmem:[#allocation5 + $0x40] sm:$0xff]  ;;  %v234_v48 = vld [vmem:[#allocation5 + $0x38] sm:$0xff] }
  0x48   :  { %921 = vmatprep.subr.mxu0 %v255_v21  ;;  %193 = vperm.xlu0 %1250, %v191_v20   ;;  %v267_v45 = vld [vmem:[#allocation5 + $0x140] sm:$0xff]  ;;  %v266_v49 = vld [vmem:[#allocation5 + $0x138] sm:$0xff]  ;;  %v249_v50 = vld [vmem:[#allocation5 + $0xb0] sm:$0xff]  ;;  %v1470_v17 = vand.u32 127, %v94_v16 }
  0x49   :  { %956 = vmatprep.subr.mxu1 %v287_v22  ;;  %1249 = vset.pattern.permute.xlu1 %v1395_v29  ;;  %v281_v51 = vld [vmem:[#allocation5 + $0x1b0] sm:$0xff]  ;;  %v248_v54 = vld [vmem:[#allocation5 + $0xa8] sm:$0xff]  ;;  %v247_v58 = vld [vmem:[#allocation5 + $0xa0] sm:$0xff] }
  0x4a   :  { %922 = vmatpush3.msra.mxu0 %v239_v24  ;;  %175 = vperm.xlu1 %1249, %v173_v23   ;;  %v233_v52 = vld [vmem:[#allocation5 + $0x30] sm:$0xff]  ;;  %v280_v55 = vld [vmem:[#allocation5 + $0x1a8] sm:$0xff]  ;;  %v279_v59 = vld [vmem:[#allocation5 + $0x1a0] sm:$0xff]  ;;  %v1473_v18 = vadd.s32 128, %v1470_v17  ;;  %v1476_v19 = vadd.s32 384, %v1470_v17  ;;  %v1479_v20 = vadd.s32 256, %v1470_v17 }
  0x4b   :  { %957 = vmatpush3.msra.mxu1 %v271_v26  ;;  %923 = vmatprep.subr.mxu0 %v254_v27  ;;  %v265_v53 = vld [vmem:[#allocation5 + $0x130] sm:$0xff]  ;;  %v232_v56 = vld [vmem:[#allocation5 + $0x28] sm:$0xff]  ;;  %v231_v60 = vld [vmem:[#allocation5 + $0x20] sm:$0xff]  ;;  %v1495_v24 = vadd.s32 640, %v1470_v17 }
  0x4c   :  { %958 = vmatprep.subr.mxu1 %v286_v28  ;;  %924 = vmatpush3.msra.mxu0 %v238_v30  ;;  %v264_v57 = vld [vmem:[#allocation5 + $0x128] sm:$0xff]  ;;  %v263_v61 = vld [vmem:[#allocation5 + $0x120] sm:$0xff]  ;;  %v246_v62 = vld [vmem:[#allocation5 + $0x98] sm:$0xff] }
  0x4d   :  { %959 = vmatpush3.msra.mxu1 %v270_v31  ;;  %925 = vmatprep.subr.mxu0 %v253_v32  ;;  %v278_v63 = vld [vmem:[#allocation5 + $0x198] sm:$0xff]  ;;  %v245_v2 = vld [vmem:[#allocation5 + $0x90] sm:$0xff]  ;;  %v244_v6 = vld [vmem:[#allocation5 + $0x88] sm:$0xff] }
  0x4e   :  { %960 = vmatprep.subr.mxu1 %v285_v33  ;;  %1251 = vset.pattern.permute.xlu1 %v1396_v39  ;;  %v230_v0 = vld [vmem:[#allocation5 + $0x18] sm:$0xff]  ;;  %v277_v3 = vld [vmem:[#allocation5 + $0x190] sm:$0xff]  ;;  %v276_v7 = vld [vmem:[#allocation5 + $0x188] sm:$0xff] }
  0x4f   :  { %926 = vmatpush3.msra.mxu0 %v237_v35  ;;  %211 = vperm.xlu1 %1251, %v209_v34   ;;  %v262_v1 = vld [vmem:[#allocation5 + $0x118] sm:$0xff]  ;;  %v229_v4 = vld [vmem:[#allocation5 + $0x10] sm:$0xff]  ;;  %v228_v8 = vld [vmem:[#allocation5 + $0x8] sm:$0xff] }
  0x50   :  { %961 = vmatpush3.msra.mxu1 %v269_v36  ;;  %927 = vmatprep.subr.mxu0 %v252_v37  ;;  %v261_v5 = vld [vmem:[#allocation5 + $0x110] sm:$0xff]  ;;  %v260_v9 = vld [vmem:[#allocation5 + $0x108] sm:$0xff]  ;;  %v243_v10 = vld [vmem:[#allocation5 + $0x80] sm:$0xff] }
  0x51   :  { %962 = vmatprep.subr.mxu1 %v284_v38  ;;  %928 = vmatpush3.msra.mxu0 %v236_v40  ;;  %v275_v11 = vld [vmem:[#allocation5 + $0x180] sm:$0xff]  ;;  %v322_v14 = vld [vmem:[#allocation5 + $0x2f8] sm:$0xff]  ;;  %v301_v16 = vld [vmem:[#allocation5 + $0x250] sm:$0xff] }
  0x52   :  { %963 = vmatpush3.msra.mxu1 %v268_v41  ;;  %929 = vmatprep.subr.mxu0 %v251_v42  ;;  %v227_v12 = vld [vmem:[#allocation5] sm:$0xff] }
  0x53   :  { %964 = vmatprep.subr.mxu1 %v283_v43  ;;  %930 = vmatpush3.msra.mxu0 %v235_v44  ;;  %v259_v13 = vld [vmem:[#allocation5 + $0x100] sm:$0xff] }
  0x54   :  { %965 = vmatpush3.msra.mxu1 %v267_v45  ;;  %931 = vmatprep.subr.mxu0 %v250_v46 }
  0x55   :  { %966 = vmatprep.subr.mxu1 %v282_v47  ;;  %932 = vmatpush3.msra.mxu0 %v234_v48 }
  0x56   :  { %967 = vmatpush3.msra.mxu1 %v266_v49  ;;  %933 = vmatprep.subr.mxu0 %v249_v50 }
  0x57   :  { %968 = vmatprep.subr.mxu1 %v281_v51  ;;  %934 = vmatpush3.msra.mxu0 %v233_v52 }
  0x58   :  { %969 = vmatpush3.msra.mxu1 %v265_v53  ;;  %935 = vmatprep.subr.mxu0 %v248_v54 }
  0x59   :  { %970 = vmatprep.subr.mxu1 %v280_v55  ;;  %936 = vmatpush3.msra.mxu0 %v232_v56 }
  0x5a   :  { %971 = vmatpush3.msra.mxu1 %v264_v57  ;;  %937 = vmatprep.subr.mxu0 %v247_v58 }
  0x5b   :  { %972 = vmatprep.subr.mxu1 %v279_v59  ;;  %938 = vmatpush3.msra.mxu0 %v231_v60 }
  0x5c   :  { %973 = vmatpush3.msra.mxu1 %v263_v61  ;;  %939 = vmatprep.subr.mxu0 %v246_v62  ;;  %v306_v61 = vld [vmem:[#allocation5 + $0x278] sm:$0xff] }
  0x5d   :  { %974 = vmatprep.subr.mxu1 %v278_v63  ;;  %940 = vmatpush3.msra.mxu0 %v230_v0  ;;  %v338_v62 = vld [vmem:[#allocation5 + $0x378] sm:$0xff]  ;;  %v321_v63 = vld [vmem:[#allocation5 + $0x2f0] sm:$0xff] }
  0x5e   :  { %975 = vmatpush3.msra.mxu1 %v262_v1  ;;  %941 = vmatprep.subr.mxu0 %v245_v2  ;;  %v305_v2 = vld [vmem:[#allocation5 + $0x270] sm:$0xff] }
  0x5f   :  { %976 = vmatprep.subr.mxu1 %v277_v3  ;;  %942 = vmatpush3.msra.mxu0 %v229_v4  ;;  %v337_v4 = vld [vmem:[#allocation5 + $0x370] sm:$0xff] }
  0x60   :  { %977 = vmatpush3.msra.mxu1 %v261_v5  ;;  %943 = vmatprep.subr.mxu0 %v244_v6  ;;  %v320_v5 = vld [vmem:[#allocation5 + $0x2e8] sm:$0xff] }
  0x61   :  { %978 = vmatprep.subr.mxu1 %v276_v7  ;;  %944 = vmatpush3.msra.mxu0 %v228_v8  ;;  %v304_v6 = vld [vmem:[#allocation5 + $0x268] sm:$0xff]  ;;  %v319_v8 = vld [vmem:[#allocation5 + $0x2e0] sm:$0xff] }
  0x62   :  { %979 = vmatpush3.msra.mxu1 %v260_v9  ;;  %945 = vmatprep.subr.mxu0 %v243_v10  ;;  %v336_v7 = vld [vmem:[#allocation5 + $0x368] sm:$0xff]  ;;  %v303_v9 = vld [vmem:[#allocation5 + $0x260] sm:$0xff] }
  0x63   :  { %980 = vmatprep.subr.mxu1 %v275_v11  ;;  %946 = vmatpush3.msra.mxu0 %v227_v12  ;;  %v335_v10 = vld [vmem:[#allocation5 + $0x360] sm:$0xff]  ;;  %v318_v11 = vld [vmem:[#allocation5 + $0x2d8] sm:$0xff] }
  0x64   :  { %981 = vmatpush3.msra.mxu1 %v259_v13  ;;  %985 = vmatprep.subr.mxu0 %v322_v14  ;;  %v302_v12 = vld [vmem:[#allocation5 + $0x258] sm:$0xff]  ;;  %v317_v14 = vld [vmem:[#allocation5 + $0x2d0] sm:$0xff] }
  0x65   :  { %1088 = vmatprep.subr.mxu1 %v1397_v15  ;;  %1252 = vset.pattern.permute.xlu0 %v1396_v39  ;;  %v334_v13 = vld [vmem:[#allocation5 + $0x358] sm:$0xff] }
  0xb9   :  { %v1481_v21 = vpop.permute.xlu0 %103 }
  0xba   :  { %vm106_vm0 = vcmp.eq.s32.totalorder %v1473_v18, %v1481_v21  ;;  %vm108_vm1 = vcmp.eq.s32.totalorder %v1476_v19, %v1481_v21  ;;  %vm105_vm2 = vcmp.eq.s32.totalorder %v1470_v17, %v1481_v21  ;;  %vm107_vm3 = vcmp.eq.s32.totalorder %v1479_v20, %v1481_v21  ;;  %v1491_v22 = vpop.permute.xlu1 %139 }
  0xbb   :  { %v113_v23 = vsel %vm106_vm0, 1.0, %v1397_v15  ;;  %vm142_vm4 = vcmp.eq.s32.totalorder %v1473_v18, %v1491_v22  ;;  %v115_v25 = vsel %vm108_vm1, 1.0, %v1397_v15  ;;  %v112_v26 = vsel %vm105_vm2, 1.0, %v1397_v15 }
  0xbc   :  { %v114_v27 = vsel %vm107_vm3, 1.0, %v1397_v15  ;;  %vm144_vm5 = vcmp.eq.s32.totalorder %v1476_v19, %v1491_v22  ;;  %vm141_vm6 = vcmp.eq.s32.totalorder %v1470_v17, %v1491_v22  ;;  %vm143_vm7 = vcmp.eq.s32.totalorder %v1479_v20, %v1491_v22 }
  0xbd   :  { %vm110_vm8 = vcmp.eq.s32.totalorder %v1495_v24, %v1481_v21 }
  0xbe   :  { %v1502_v28 = vpop.permute.xlu0 %121  ;;  %v117_v38 = vsel %vm110_vm8, 1.0, %v1397_v15 }
  0xbf   :  { %vm124_vm9 = vcmp.eq.s32.totalorder %v1473_v18, %v1502_v28  ;;  %vm126_vm10 = vcmp.eq.s32.totalorder %v1476_v19, %v1502_v28  ;;  %vm123_vm11 = vcmp.eq.s32.totalorder %v1470_v17, %v1502_v28  ;;  %vm125_vm12 = vcmp.eq.s32.totalorder %v1479_v20, %v1502_v28 }
  0xc0   :  { %v1520_v29 = vpop.permute.xlu1 %157  ;;  %v131_v30 = vsel %vm124_vm9, 1.0, %v113_v23  ;;  %v133_v31 = vsel %vm126_vm10, 1.0, %v115_v25  ;;  %v130_v32 = vsel %vm123_vm11, 1.0, %v112_v26  ;;  %v132_v33 = vsel %vm125_vm12, 1.0, %v114_v27  ;;  %v332_v23 = vld [vmem:[#allocation5 + $0x348] sm:$0xff]  ;;  %v299_v25 = vld [vmem:[#allocation5 + $0x240] sm:$0xff] }
  0xc1   :  { %v149_v34 = vsel %vm142_vm4, 1.0, %v131_v30  ;;  %vm160_vm13 = vcmp.eq.s32.totalorder %v1473_v18, %v1520_v29  ;;  %v151_v35 = vsel %vm144_vm5, 1.0, %v133_v31  ;;  %vm162_vm14 = vcmp.eq.s32.totalorder %v1476_v19, %v1520_v29  ;;  %v331_v26 = vld [vmem:[#allocation5 + $0x340] sm:$0xff]  ;;  %v314_v27 = vld [vmem:[#allocation5 + $0x2b8] sm:$0xff] }
  0xc2   :  { %v167_v36 = vsel %vm160_vm13, 1.0, %v149_v34  ;;  %v148_v37 = vsel %vm141_vm6, 1.0, %v130_v32  ;;  %vm159_vm15 = vcmp.eq.s32.totalorder %v1470_v17, %v1520_v29  ;;  %v169_v40 = vsel %vm162_vm14, 1.0, %v151_v35  ;;  %v298_v32 = vld [vmem:[#allocation5 + $0x238] sm:$0xff]  ;;  %v313_v34 = vld [vmem:[#allocation5 + $0x2b0] sm:$0xff] }
  0xc3   :  { %v1538_v39 = vpop.permute.xlu0 %193  ;;  %v150_v41 = vsel %vm143_vm7, 1.0, %v132_v33  ;;  %vm161_vm0 = vcmp.eq.s32.totalorder %v1479_v20, %v1520_v29  ;;  %vm128_vm1 = vcmp.eq.s32.totalorder %v1495_v24, %v1502_v28  ;;  %v166_v42 = vsel %vm159_vm15, 1.0, %v148_v37  ;;  %v330_v33 = vld [vmem:[#allocation5 + $0x338] sm:$0xff]  ;;  %v297_v35 = vld [vmem:[#allocation5 + $0x230] sm:$0xff]  ;;  %v296_v37 = vld [vmem:[#allocation5 + $0x228] sm:$0xff] }
  0xc4   :  { %vm196_vm2 = vcmp.eq.s32.totalorder %v1473_v18, %v1538_v39  ;;  %vm198_vm3 = vcmp.eq.s32.totalorder %v1476_v19, %v1538_v39  ;;  %vm195_vm4 = vcmp.eq.s32.totalorder %v1470_v17, %v1538_v39  ;;  %v168_v44 = vsel %vm161_vm0, 1.0, %v150_v41  ;;  %v311_v41 = vld [vmem:[#allocation5 + $0x2a0] sm:$0xff] }
  0xc5   :  { %v1553_v43 = vpop.permute.xlu1 %175  ;;  %vm197_vm5 = vcmp.eq.s32.totalorder %v1479_v20, %v1538_v39  ;;  %v135_v45 = vsel %vm128_vm1, 1.0, %v117_v38  ;;  %vm164_vm6 = vcmp.eq.s32.totalorder %v1495_v24, %v1520_v29  ;;  %vm146_vm11 = vcmp.eq.s32.totalorder %v1495_v24, %v1491_v22 }
  0xc6   :  { %vm178_vm7 = vcmp.eq.s32.totalorder %v1473_v18, %v1553_v43  ;;  %vm180_vm8 = vcmp.eq.s32.totalorder %v1476_v19, %v1553_v43  ;;  %vm177_vm9 = vcmp.eq.s32.totalorder %v1470_v17, %v1553_v43  ;;  %vm179_vm10 = vcmp.eq.s32.totalorder %v1479_v20, %v1553_v43 }
  0xc7   :  { %v185_v46 = vsel %vm178_vm7, 1.0, %v167_v36  ;;  %v187_v47 = vsel %vm180_vm8, 1.0, %v169_v40  ;;  %v184_v48 = vsel %vm177_vm9, 1.0, %v166_v42  ;;  %v186_v49 = vsel %vm179_vm10, 1.0, %v168_v44  ;;  %v312_v36 = vld [vmem:[#allocation5 + $0x2a8] sm:$0xff]  ;;  %v295_v42 = vld [vmem:[#allocation5 + $0x220] sm:$0xff] }
  0xc8   :  { %v203_v50 = vsel %vm196_vm2, 1.0, %v185_v46  ;;  %v205_v51 = vsel %vm198_vm3, 1.0, %v187_v47  ;;  %v153_v52 = vsel %vm146_vm11, 1.0, %v135_v45  ;;  %vm200_vm12 = vcmp.eq.s32.totalorder %v1495_v24, %v1538_v39  ;;  %v327_v44 = vld [vmem:[#allocation5 + $0x320] sm:$0xff]  ;;  %v310_v45 = vld [vmem:[#allocation5 + $0x298] sm:$0xff] }
  0xc9   :  { %v202_v54 = vsel %vm195_vm4, 1.0, %v184_v48  ;;  %v204_v55 = vsel %vm197_vm5, 1.0, %v186_v49  ;;  %v171_v56 = vsel %vm164_vm6, 1.0, %v153_v52  ;;  %vm182_vm13 = vcmp.eq.s32.totalorder %v1495_v24, %v1553_v43  ;;  %v294_v48 = vld [vmem:[#allocation5 + $0x218] sm:$0xff]  ;;  %v309_v49 = vld [vmem:[#allocation5 + $0x290] sm:$0xff] }
  0xca   :  { %v1577_v53 = vpop.permute.xlu1 %211  ;;  %v189_v0 = vsel %vm182_vm13, 1.0, %v171_v56  ;;  %v1610_v30 = vadd.s32 512, %v1470_v17  ;;  %v1613_v31 = vadd.s32 768, %v1470_v17  ;;  %v324_v56 = vld [vmem:[#allocation5 + $0x308] sm:$0xff] }
  0xcb   :  { %vm214_vm14 = vcmp.eq.s32.totalorder %v1473_v18, %v1577_v53  ;;  %vm216_vm15 = vcmp.eq.s32.totalorder %v1476_v19, %v1577_v53  ;;  %vm213_vm0 = vcmp.eq.s32.totalorder %v1470_v17, %v1577_v53  ;;  %vm215_vm1 = vcmp.eq.s32.totalorder %v1479_v20, %v1577_v53  ;;  %v333_v18 = vld [vmem:[#allocation5 + $0x350] sm:$0xff]  ;;  %v316_v19 = vld [vmem:[#allocation5 + $0x2c8] sm:$0xff] }
  0xcc   :  { %v221_v57 = vsel %vm214_vm14, 1.0, %v203_v50  ;;  %v223_v58 = vsel %vm216_vm15, 1.0, %v205_v51  ;;  %v220_v59 = vsel %vm213_vm0, 1.0, %v202_v54  ;;  %v222_v60 = vsel %vm215_vm1, 1.0, %v204_v55  ;;  %v300_v20 = vld [vmem:[#allocation5 + $0x248] sm:$0xff]  ;;  %v329_v17 = vld [vmem:[#allocation5 + $0x330] sm:$0xff] }
  0xcd   :  { %403 = vmatprep.mubr.f32.mxu0 %v221_v57  ;;  %473 = vmatprep.mubr.f32.mxu1 %v223_v58  ;;  %vm218_vm2 = vcmp.eq.s32.totalorder %v1495_v24, %v1577_v53  ;;  %v207_v1 = vsel %vm200_vm12, 1.0, %v189_v0  ;;  %v315_v24 = vld [vmem:[#allocation5 + $0x2c0] sm:$0xff]  ;;  %vm109_vm3 = vcmp.eq.s32.totalorder %v1610_v30, %v1481_v21  ;;  %vm111_vm4 = vcmp.eq.s32.totalorder %v1613_v31, %v1481_v21  ;;  %v328_v21 = vld [vmem:[#allocation5 + $0x328] sm:$0xff]  ;;  %v293_v50 = vld [vmem:[#allocation5 + $0x210] sm:$0xff] }
  0xce   :  { %404 = vmatmul.mubr.f32.vlgmr.msra.gmra.mxu0 %v220_v59  ;;  %474 = vmatmul.mubr.f32.vlgmr.msra.gmra.mxu1 %v222_v60  ;;  %v225_v3 = vsel %vm218_vm2, 1.0, %v207_v1  ;;  %v116_v38 = vsel %vm109_vm3, 1.0, %v1397_v15  ;;  %vm127_vm5 = vcmp.eq.s32.totalorder %v1610_v30, %v1502_v28  ;;  %v118_v40 = vsel %vm111_vm4, 1.0, %v1397_v15  ;;  %v325_v54 = vld [vmem:[#allocation5 + $0x310] sm:$0xff]  ;;  %v308_v55 = vld [vmem:[#allocation5 + $0x288] sm:$0xff]  ;;  %v307_v57 = vld [vmem:[#allocation5 + $0x280] sm:$0xff] }
  0xcf   :  { %986 = vmatpush3.msra.mxu0 %v306_v61  ;;  %1089 = vmatpush3.msra.mxu1 %v338_v62  ;;  %vm129_vm6 = vcmp.eq.s32.totalorder %v1613_v31, %v1502_v28  ;;  %v134_v46 = vsel %vm127_vm5, 1.0, %v116_v38  ;;  %v326_v28 = vld [vmem:[#allocation5 + $0x318] sm:$0xff]  ;;  %vm145_vm7 = vcmp.eq.s32.totalorder %v1610_v30, %v1491_v22  ;;  %vm147_vm8 = vcmp.eq.s32.totalorder %v1613_v31, %v1491_v22  ;;  %v292_v22 = vld [vmem:[#allocation5 + $0x208] sm:$0xff]  ;;  %v291_v60 = vld [vmem:[#allocation5 + $0x200] sm:$0xff] }
  0xd0   :  { %987 = vmatprep.subr.mxu0 %v321_v63  ;;  %543 = vmatprep.mubr.f32.mxu0 %v225_v3  ;;  %v136_v47 = vsel %vm129_vm6, 1.0, %v118_v40  ;;  %v152_v51 = vsel %vm145_vm7, 1.0, %v134_v46  ;;  %vm163_vm9 = vcmp.eq.s32.totalorder %v1610_v30, %v1520_v29  ;;  %vm165_vm10 = vcmp.eq.s32.totalorder %v1613_v31, %v1520_v29  ;;  %v323_v62 = vld [vmem:[#allocation5 + $0x300] sm:$0xff]  ;;  %v729_v1 = vld [vmem:[#allocation8 + $0x78] sm:$0xff]  ;;  %v728_v3 = vld [vmem:[#allocation8 + $0x70] sm:$0xff] }
  0xd1   :  { %1090 = vmatprep.subr.mxu1 %v1397_v15  ;;  %988 = vmatpush3.msra.mxu0 %v305_v2  ;;  %v154_v52 = vsel %vm147_vm8, 1.0, %v136_v47  ;;  %vm181_vm11 = vcmp.eq.s32.totalorder %v1610_v30, %v1553_v43  ;;  %vm183_vm12 = vcmp.eq.s32.totalorder %v1613_v31, %v1553_v43  ;;  %v170_v58 = vsel %vm163_vm9, 1.0, %v152_v51  ;;  %v633_v2 = vld [vmem:[#allocation7 + $0x70] sm:$0xff]  ;;  %v815_v51 = vld [vmem:[#allocation10 + $0x78] sm:$0xff] }
  0xd2   :  { %1091 = vmatpush3.msra.mxu1 %v337_v4  ;;  %989 = vmatprep.subr.mxu0 %v320_v5  ;;  %v172_v59 = vsel %vm165_vm10, 1.0, %v154_v52  ;;  %v188_v61 = vsel %vm181_vm11, 1.0, %v170_v58  ;;  %vm199_vm13 = vcmp.eq.s32.totalorder %v1610_v30, %v1538_v39  ;;  %vm201_vm14 = vcmp.eq.s32.totalorder %v1613_v31, %v1538_v39  ;;  %v632_v4 = vld [vmem:[#allocation7 + $0x68] sm:$0xff]  ;;  %v814_v52 = vld [vmem:[#allocation10 + $0x70] sm:$0xff]  ;;  %v808_v58 = vld [vmem:[#allocation10 + $0x40] sm:$0xff] }
  0xd3   :  { %1092 = vmatprep.subr.mxu1 %v1397_v15  ;;  %990 = vmatpush3.msra.mxu0 %v304_v6  ;;  %v190_v43 = vsel %vm183_vm12, 1.0, %v172_v59  ;;  %vm217_vm15 = vcmp.eq.s32.totalorder %v1610_v30, %v1577_v53  ;;  %vm219_vm0 = vcmp.eq.s32.totalorder %v1613_v31, %v1577_v53  ;;  %v206_v29 = vsel %vm199_vm13, 1.0, %v188_v61  ;;  %v634_v53 = vld [vmem:[#allocation7 + $0x78] sm:$0xff]  ;;  %v727_v5 = vld [vmem:[#allocation8 + $0x68] sm:$0xff]  ;;  %v631_v6 = vld [vmem:[#allocation7 + $0x60] sm:$0xff] }
  0xd4   :  { %1093 = vmatpush3.msra.mxu1 %v336_v7  ;;  %991 = vmatprep.subr.mxu0 %v319_v8  ;;  %v208_v63 = vsel %vm201_vm14, 1.0, %v190_v43  ;;  %vm1398_vm1 = vmmov 0   ;;  %v224_v39 = vsel %vm217_vm15, 1.0, %v206_v29  ;;  %v726_v7 = vld [vmem:[#allocation8 + $0x60] sm:$0xff]  ;;  %v630_v8 = vld [vmem:[#allocation7 + $0x58] sm:$0xff]  ;;  %v805_v61 = vld [vmem:[#allocation10 + $0x28] sm:$0xff] }
  0xd5   :  { %1094 = vmatprep.subr.mxu1 %v1397_v15  ;;  %992 = vmatpush3.msra.mxu0 %v303_v9  ;;  %v226_v0 = vsel %vm219_vm0, 1.0, %v208_v63  ;;  %v725_v9 = vld [vmem:[#allocation8 + $0x58] sm:$0xff]  ;;  %v804_v43 = vld [vmem:[#allocation10 + $0x20] sm:$0xff]  ;;  %v802_v29 = vld [vmem:[#allocation10 + $0x10] sm:$0xff] }
  0xd6   :  { %1095 = vmatpush3.msra.mxu1 %v335_v10  ;;  %993 = vmatprep.subr.mxu0 %v318_v11  ;;  %v629_v10 = vld [vmem:[#allocation7 + $0x50] sm:$0xff]  ;;  %v622_v30 = vld [vmem:[#allocation7 + $0x18] sm:$0xff]  ;;  %v801_v63 = vld [vmem:[#allocation10 + $0x8] sm:$0xff] }
  0xd7   :  { %1096 = vmatprep.subr.mxu1 %v1397_v15  ;;  %994 = vmatpush3.msra.mxu0 %v302_v12  ;;  %v724_v11 = vld [vmem:[#allocation8 + $0x50] sm:$0xff]  ;;  %v628_v12 = vld [vmem:[#allocation7 + $0x48] sm:$0xff]  ;;  %v717_v31 = vld [vmem:[#allocation8 + $0x18] sm:$0xff] }
  0xd8   :  { %1097 = vmatpush3.msra.mxu1 %v334_v13  ;;  %995 = vmatprep.subr.mxu0 %v317_v14  ;;  %v723_v13 = vld [vmem:[#allocation8 + $0x48] sm:$0xff]  ;;  %v627_v14 = vld [vmem:[#allocation7 + $0x40] sm:$0xff]  ;;  %v807_v59 = vld [vmem:[#allocation10 + $0x38] sm:$0xff] }
  0xd9   :  { %1098 = vmatprep.subr.mxu1 %v1397_v15  ;;  %996 = vmatpush3.msra.mxu0 %v301_v16  ;;  %v722_v16 = vld [vmem:[#allocation8 + $0x40] sm:$0xff] }
  0xda   :  { %1099 = vmatpush3.msra.mxu1 %v333_v18  ;;  %997 = vmatprep.subr.mxu0 %v316_v19  ;;  %v626_v18 = vld [vmem:[#allocation7 + $0x38] sm:$0xff] }
  0xdb   :  { %1100 = vmatprep.subr.mxu1 %v1397_v15  ;;  %998 = vmatpush3.msra.mxu0 %v300_v20  ;;  %v721_v19 = vld [vmem:[#allocation8 + $0x38] sm:$0xff]  ;;  %v625_v20 = vld [vmem:[#allocation7 + $0x30] sm:$0xff] }
  0xdc   :  { %1101 = vmatpush3.msra.mxu1 %v332_v23  ;;  %999 = vmatprep.subr.mxu0 %v315_v24  ;;  %v720_v23 = vld [vmem:[#allocation8 + $0x30] sm:$0xff]  ;;  %v624_v24 = vld [vmem:[#allocation7 + $0x28] sm:$0xff] }
  0xdd   :  { %1102 = vmatprep.subr.mxu1 %v1397_v15  ;;  %1000 = vmatpush3.msra.mxu0 %v299_v25  ;;  %v719_v25 = vld [vmem:[#allocation8 + $0x28] sm:$0xff] }
  0xde   :  { %1103 = vmatpush3.msra.mxu1 %v331_v26  ;;  %1001 = vmatprep.subr.mxu0 %v314_v27  ;;  %v623_v26 = vld [vmem:[#allocation7 + $0x20] sm:$0xff] }
  0xdf   :  { %1104 = vmatprep.subr.mxu1 %v1397_v15  ;;  %1002 = vmatpush3.msra.mxu0 %v298_v32  ;;  %v718_v27 = vld [vmem:[#allocation8 + $0x20] sm:$0xff]  ;;  %v621_v32 = vld [vmem:[#allocation7 + $0x10] sm:$0xff] }
  0xe0   :  { %1105 = vmatpush3.msra.mxu1 %v330_v33  ;;  %1003 = vmatprep.subr.mxu0 %v313_v34  ;;  %v716_v33 = vld [vmem:[#allocation8 + $0x10] sm:$0xff]  ;;  %v620_v34 = vld [vmem:[#allocation7 + $0x8] sm:$0xff] }
  0xe1   :  { %1106 = vmatprep.subr.mxu1 %v1397_v15  ;;  %1004 = vmatpush3.msra.mxu0 %v297_v35  ;;  %v715_v35 = vld [vmem:[#allocation8 + $0x8] sm:$0xff] }
  0xe2   :  { %1107 = vmatpush3.msra.mxu1 %v329_v17  ;;  %1005 = vmatprep.subr.mxu0 %v312_v36  ;;  %v619_v17 = vld [vmem:[#allocation7] sm:$0xff] }
  0xe3   :  { %1108 = vmatprep.subr.mxu1 %v1397_v15  ;;  %1006 = vmatpush3.msra.mxu0 %v296_v37  ;;  %v714_v36 = vld [vmem:[#allocation8] sm:$0xff] }
  0xe4   :  { %1109 = vmatpush3.msra.mxu1 %v328_v21  ;;  %1007 = vmatprep.subr.mxu0 %v311_v41 }
  0xe5   :  { %1110 = vmatprep.subr.mxu1 %v1397_v15  ;;  %1008 = vmatpush3.msra.mxu0 %v295_v42 }
  0xe6   :  { %1111 = vmatpush3.msra.mxu1 %v327_v44  ;;  %1009 = vmatprep.subr.mxu0 %v310_v45 }
  0xe7   :  { %1112 = vmatprep.subr.mxu1 %v1397_v15  ;;  %1010 = vmatpush3.msra.mxu0 %v294_v48 }
  0xe8   :  { %1113 = vmatpush3.msra.mxu1 %v326_v28  ;;  %1011 = vmatprep.subr.mxu0 %v309_v49 }
  0xe9   :  { %1114 = vmatprep.subr.mxu1 %v1397_v15  ;;  %1012 = vmatpush3.msra.mxu0 %v293_v50 }
  0xea   :  { %1115 = vmatpush3.msra.mxu1 %v325_v54  ;;  %1013 = vmatprep.subr.mxu0 %v308_v55  ;;  %v813_v54 = vld [vmem:[#allocation10 + $0x68] sm:$0xff]  ;;  %v812_v55 = vld [vmem:[#allocation10 + $0x60] sm:$0xff] }
  0xeb   :  { %1116 = vmatprep.subr.mxu1 %v1397_v15  ;;  %1014 = vmatpush3.msra.mxu0 %v292_v22  ;;  %v811_v22 = vld [vmem:[#allocation10 + $0x58] sm:$0xff] }
  0xec   :  { %1117 = vmatpush3.msra.mxu1 %v324_v56  ;;  %1015 = vmatprep.subr.mxu0 %v307_v57  ;;  %v810_v56 = vld [vmem:[#allocation10 + $0x50] sm:$0xff]  ;;  %v809_v57 = vld [vmem:[#allocation10 + $0x48] sm:$0xff] }
  0xed   :  { %1118 = vmatprep.subr.mxu1 %v1397_v15  ;;  %1016 = vmatpush3.msra.mxu0 %v291_v60  ;;  %v806_v60 = vld [vmem:[#allocation10 + $0x30] sm:$0xff] }
  0xee   :  { %1119 = vmatpush3.msra.mxu1 %v323_v62  ;;  %1120 = vmatprep.mubr.msk.f32.mxu1 %vm1398_vm1, %v1397_v15  ;;  %v803_v62 = vld [vmem:[#allocation10 + $0x18] sm:$0xff] }
  0xef   :  { %544 = vmatmul.mubr.f32.vlgmr.msra.gmra.mxu0 %v224_v39  ;;  %1121 = vmatmul.mubr.f32.vlgmr.msra.gmra.mxu1 %v226_v0  ;;  %v800_v39 = vld [vmem:[#allocation10] sm:$0xff]  ;;  %v913_v0 = vld [vmem:[%s1725_s3] ss:$0 sm:$0xff]  ;;  %s1355_s3 = scalar_lea.vmem %s903_s28, 128 }
  0xf0   :  { %1123 = vmatprep.subr.mxu0 %v1397_v15  ;;  %1158 = vmatprep.subr.mxu1 %v1397_v15  ;;  %p1356_p11 = scmp.ne.s32.totalorder %s903_s28, %s1355_s3  ;;  %p1361_p13 = scmp.lt.s32.totalorder %s1355_s3, %s1355_s3 }
  0xf1   :  { %1155 = vmatprep.mubr.msk.f32.mxu0 %vm1398_vm1, %v1397_v15  ;;  %1190 = vmatprep.mubr.msk.f32.mxu1 %vm1398_vm1, %v1397_v15 }
  0xf2   :  { %1124 = vmatpush3.msra.mxu0 %v634_v53  ;;  %1159 = vmatpush3.msra.mxu1 %v729_v1  ;;  %p1362_p0 = por %p1361_p13, %p1360_p12 }
  0xf3   :  { %1125 = vmatprep.subr.mxu0 %v1397_v15  ;;  %1160 = vmatprep.subr.mxu1 %v1397_v15 }
  0xf4   :  { %1126 = vmatpush3.msra.mxu0 %v633_v2  ;;  %1161 = vmatpush3.msra.mxu1 %v728_v3  ;;  %p1363_p1 = pnand %p1362_p0, %p1356_p11 }
  0xf5   :  { %1127 = vmatprep.subr.mxu0 %v1397_v15  ;;  %1162 = vmatprep.subr.mxu1 %v1397_v15 }
  0xf6   :  { %1128 = vmatpush3.msra.mxu0 %v632_v4  ;;  %1163 = vmatpush3.msra.mxu1 %v727_v5 }
  0xf7   :  { %1129 = vmatprep.subr.mxu0 %v1397_v15  ;;  %1164 = vmatprep.subr.mxu1 %v1397_v15 }
  0xf8   :  { %1130 = vmatpush3.msra.mxu0 %v631_v6  ;;  %1165 = vmatpush3.msra.mxu1 %v726_v7  ;;  %v914_v6 = vld [vmem:[%s1728_s6] ss:$0 sm:$0xff] }
  0xf9   :  { %1131 = vmatprep.subr.mxu0 %v1397_v15  ;;  %1166 = vmatprep.subr.mxu1 %v1397_v15 }
  0xfa   :  { %1132 = vmatpush3.msra.mxu0 %v630_v8  ;;  %1167 = vmatpush3.msra.mxu1 %v725_v9 }
  0xfb   :  { %1133 = vmatprep.subr.mxu0 %v1397_v15  ;;  %1168 = vmatprep.subr.mxu1 %v1397_v15 }
  0xfc   :  { %1134 = vmatpush3.msra.mxu0 %v629_v10  ;;  %1169 = vmatpush3.msra.mxu1 %v724_v11 }
  0xfd   :  { %1135 = vmatprep.subr.mxu0 %v1397_v15  ;;  %1170 = vmatprep.subr.mxu1 %v1397_v15 }
  0xfe   :  { %1136 = vmatpush3.msra.mxu0 %v628_v12  ;;  %1171 = vmatpush3.msra.mxu1 %v723_v13 }
  0xff   :  { %1137 = vmatprep.subr.mxu0 %v1397_v15  ;;  %1172 = vmatprep.subr.mxu1 %v1397_v15 }
 0x100   :  { %1138 = vmatpush3.msra.mxu0 %v627_v14  ;;  %1173 = vmatpush3.msra.mxu1 %v722_v16 }
 0x101   :  { %1139 = vmatprep.subr.mxu0 %v1397_v15  ;;  %1174 = vmatprep.subr.mxu1 %v1397_v15 }
 0x102   :  { %1140 = vmatpush3.msra.mxu0 %v626_v18  ;;  %1175 = vmatpush3.msra.mxu1 %v721_v19 }
 0x103   :  { %1141 = vmatprep.subr.mxu0 %v1397_v15  ;;  %1176 = vmatprep.subr.mxu1 %v1397_v15 }
 0x104   :  { %1142 = vmatpush3.msra.mxu0 %v625_v20  ;;  %1177 = vmatpush3.msra.mxu1 %v720_v23 }
 0x105   :  { %1143 = vmatprep.subr.mxu0 %v1397_v15  ;;  %1178 = vmatprep.subr.mxu1 %v1397_v15 }
 0x106   :  { %1144 = vmatpush3.msra.mxu0 %v624_v24  ;;  %1179 = vmatpush3.msra.mxu1 %v719_v25 }
 0x107   :  { %1145 = vmatprep.subr.mxu0 %v1397_v15  ;;  %1180 = vmatprep.subr.mxu1 %v1397_v15 }
 0x108   :  { %1146 = vmatpush3.msra.mxu0 %v623_v26  ;;  %1181 = vmatpush3.msra.mxu1 %v718_v27 }
 0x109   :  { %1147 = vmatprep.subr.mxu0 %v1397_v15  ;;  %1182 = vmatprep.subr.mxu1 %v1397_v15 }
 0x10a   :  { %1148 = vmatpush3.msra.mxu0 %v622_v30  ;;  %1183 = vmatpush3.msra.mxu1 %v717_v31 }
 0x10b   :  { %1149 = vmatprep.subr.mxu0 %v1397_v15  ;;  %1184 = vmatprep.subr.mxu1 %v1397_v15 }
 0x10c   :  { %1150 = vmatpush3.msra.mxu0 %v621_v32  ;;  %1185 = vmatpush3.msra.mxu1 %v716_v33 }
 0x10d   :  { %1151 = vmatprep.subr.mxu0 %v1397_v15  ;;  %1186 = vmatprep.subr.mxu1 %v1397_v15 }
 0x10e   :  { %1152 = vmatpush3.msra.mxu0 %v620_v34  ;;  %1187 = vmatpush3.msra.mxu1 %v715_v35 }
 0x10f   :  { %1153 = vmatprep.subr.mxu0 %v1397_v15  ;;  %1188 = vmatprep.subr.mxu1 %v1397_v15 }
 0x110   :  { %1154 = vmatpush3.msra.mxu0 %v619_v17  ;;  %1189 = vmatpush3.msra.mxu1 %v714_v36 }
 0x111   :  { %1193 = vmatprep.subr.mxu0 %v1397_v15 }
 0x18e   :  { %v947_v37 = vpop.f32.mrf.mxu0  ;;  %v982_v38 = vpop.f32.mrf.mxu1 }
 0x190   :  { %v948_v40 = vpop.f32.mrf.mxu0  ;;  %v983_v21 = vpop.f32.mrf.mxu1 }
 0x191   :  { %v949_v41 = vadd.f32 %v948_v40, %v947_v37  ;;  %v984_v42 = vadd.f32 %v983_v21, %v982_v38 }
 0x193   :  { %v476_v48 = vadd.f32 %v984_v42, %v949_v41 }
 0x1af   :  { %v1017_v44 = vpop.f32.mrf.mxu0  ;;  %v615_v45 = vpop.f32.mrf.mxu1 }
 0x1b1   :  { %v1018_v46 = vpop.f32.mrf.mxu0  ;;  %v1122_v47 = vpop.f32.mrf.mxu1 }
 0x1b2   :  { %v1019_v28 = vadd.f32 %v1018_v46, %v1017_v44 }
 0x1b4   :  { %v546_v49 = vadd.f32 %v1019_v28, %v476_v48 }
 0x1b6   :  { %v616_v50 = vadd.f32 %v615_v45, %v546_v49 }
 0x1b8   :  { %1156 = vmatmul.mubr.f32.vlgmr.msra.gmra.mxu0 %v616_v50  ;;  %1191 = vmatmul.mubr.f32.vlgmr.msra.gmra.mxu1 %v616_v50 }
 0x1b9   :  { %1194 = vmatpush3.msra.mxu0 %v815_v51  ;;  %1225 = vmatprep.mubr.msk.f32.mxu0 %vm1398_vm1, %v1397_v15 }
 0x1ba   :  { %1195 = vmatprep.subr.mxu0 %v1397_v15 }
 0x1bb   :  { %1196 = vmatpush3.msra.mxu0 %v814_v52 }
 0x1bc   :  { %1197 = vmatprep.subr.mxu0 %v1397_v15 }
 0x1bd   :  { %1198 = vmatpush3.msra.mxu0 %v813_v54 }
 0x1be   :  { %1199 = vmatprep.subr.mxu0 %v1397_v15 }
 0x1bf   :  { %1200 = vmatpush3.msra.mxu0 %v812_v55 }
 0x1c0   :  { %1201 = vmatprep.subr.mxu0 %v1397_v15 }
 0x1c1   :  { %1202 = vmatpush3.msra.mxu0 %v811_v22 }
 0x1c2   :  { %1203 = vmatprep.subr.mxu0 %v1397_v15 }
 0x1c3   :  { %1204 = vmatpush3.msra.mxu0 %v810_v56 }
 0x1c4   :  { %1205 = vmatprep.subr.mxu0 %v1397_v15 }
 0x1c5   :  { %1206 = vmatpush3.msra.mxu0 %v809_v57 }
 0x1c6   :  { %1207 = vmatprep.subr.mxu0 %v1397_v15 }
 0x1c7   :  { %1208 = vmatpush3.msra.mxu0 %v808_v58 }
 0x1c8   :  { %1209 = vmatprep.subr.mxu0 %v1397_v15 }
 0x1c9   :  { %1210 = vmatpush3.msra.mxu0 %v807_v59 }
 0x1ca   :  { %1211 = vmatprep.subr.mxu0 %v1397_v15 }
 0x1cb   :  { %1212 = vmatpush3.msra.mxu0 %v806_v60 }
 0x1cc   :  { %1213 = vmatprep.subr.mxu0 %v1397_v15 }
 0x1cd   :  { %1214 = vmatpush3.msra.mxu0 %v805_v61 }
 0x1ce   :  { %1215 = vmatprep.subr.mxu0 %v1397_v15 }
 0x1cf   :  { %1216 = vmatpush3.msra.mxu0 %v804_v43 }
 0x1d0   :  { %1217 = vmatprep.subr.mxu0 %v1397_v15 }
 0x1d1   :  { %1218 = vmatpush3.msra.mxu0 %v803_v62 }
 0x1d2   :  { %1219 = vmatprep.subr.mxu0 %v1397_v15 }
 0x1d3   :  { %1220 = vmatpush3.msra.mxu0 %v802_v29 }
 0x1d4   :  { %1221 = vmatprep.subr.mxu0 %v1397_v15 }
 0x1d5   :  { %1222 = vmatpush3.msra.mxu0 %v801_v63 }
 0x1d6   :  { %1223 = vmatprep.subr.mxu0 %v1397_v15 }
 0x1d7   :  { %1224 = vmatpush3.msra.mxu0 %v800_v39 }
 0x278   :  { %v701_v53 = vpop.f32.mrf.mxu0  ;;  %v796_v1 = vpop.f32.mrf.mxu1 }
 0x279   :  { %v712_v2 = vadd.f32 %v913_v0, %v701_v53  ;;  %v893_v15 = vadd.f32 %v914_v6, %v796_v1 }
 0x27a   :  { %v1157_v3 = vpop.f32.mrf.mxu0  ;;  %v1192_v4 = vpop.f32.mrf.mxu1 }
 0x27b   :  { %1253 = vtanh.f32 %v712_v2 }
 0x288   :  { %v1254_v5 = vpop.eup %1253 }
 0x289   :  { %1226 = vmatmul.mubr.f32.vlgmr.msra.gmra.mxu0 %v1254_v5 }
 0x349   :  { %v882_v7 = vpop.f32.mrf.mxu0 }
 0x34a   :  { %v894_v8 = vadd.f32 %v893_v15, %v882_v7 }
 0x34b   :  { %v1227_v9 = vpop.f32.mrf.mxu0 }
 0x34c   :  { %895 = vst [vmem:[#allocation11] sm:$0xff] %v894_v8 }
 0x34d   :  { %1366 = shalt.err (!%p1363_p1)
}
 0x34e   :  { %905 = dma.vmem_to_hbm [thread:$0]  %s903_s28, 128, %s1729_s7, [#allocation4]  }
 0x34f   :  { %1381 = dma.done.wait [#allocation4], 128  }
 0x350   :  { %1382 = vsyncadd [#allocation4], 4294967168 }
 0x351   :  { %909 = vsyncpa [#allocation3], 1 }
 0x352   :  { %910 = vsyncpa [#allocation6], 1 }
 0x353   :  { %911 = vsyncpa [#allocation9], 1 }
 0x354   :  { %912 = vsyncpa [#allocation4], 1 }

</bundles_post_ra>
